<compile_context>
chip_gen: v7x
topology: tpu7x:2x2x1
jax: 0.10.0
libtpu: 0.0.40
codegen_flags: <defaults>
</compile_context>

<pallas_src>
import jax
import jax.numpy as jnp
from jax.experimental import pallas as pl
from jax.experimental.pallas import tpu as pltpu


def _shift_tokens(x, s):
    """y[..., w] = x[..., w - s] with zero fill at the sequence edges (static s)."""
    W = x.shape[-1]
    if s == 0:
        return x
    if abs(s) >= W:
        return jnp.zeros_like(x)
    fill = jnp.zeros(x.shape[:-1] + (abs(s),), dtype=x.dtype)
    if s > 0:
        return jnp.concatenate([fill, x[..., : W - s]], axis=-1)
    return jnp.concatenate([x[..., -s:], fill], axis=-1)


def _repmixer_kernel(x_ref, prm_ref, out_ref):
    """Fused RepMixer over a block of rows, native (rows, C, W) layout.

    x_ref  : (R, C, W)    activations; channels -> sublanes, tokens -> lanes
    prm_ref: (K+1, C, 1)  [alpha, beta, w_eff_k for k != pad (increasing k)]
    out_ref: (R, C, W)
    """
    K = prm_ref.shape[0] - 1
    pad = K // 2

    x = x_ref[...].astype(jnp.float32)              # (R, C, W)
    alpha = prm_ref[0].astype(jnp.float32)          # (C, 1): broadcasts along lanes
    beta = prm_ref[1].astype(jnp.float32)           # (C, 1)

    acc = x * alpha + beta                          # skip/scale/center-tap path, fully folded

    # Off-center depthwise-conv taps: in-register lane shifts (no HBM halo).
    j = 2
    for k in range(K):                              # K static & small -> unrolled
        if k == pad:
            continue
        w_eff = prm_ref[j].astype(jnp.float32)      # (C, 1)
        acc = acc + _shift_tokens(x, pad - k) * w_eff
        j += 1

    out_ref[...] = acc.astype(out_ref.dtype)


def fold_bn(gamma, beta, mean, var, eps=1e-5):
    """Fold running-stat BN into y*a + b."""
    a = gamma / jnp.sqrt(var + eps)
    return a, beta - mean * a


def build_params(w_conv, bn_ms, bn_ns, bn_mc, layer_scale, *, scale_branch=None, eps=1e-5):
    """Fold BN affines, layer_scale, conv weights (and optional 1x1 scale branch) into (K+1, C, 1).

    w_conv      : (C, K)  depthwise (1, K) conv weight
    bn_*        : (gamma, beta, mean, var) tuples of shape (C,)
    layer_scale : (C,) or (C, 1, 1)
    scale_branch: optional (w_scale (C,), bn_sc) for MobileOneBlock's 1x1 depthwise scale branch
    """
    C, K = w_conv.shape
    pad = K // 2
    ls = jnp.reshape(layer_scale, (-1,))

    a_ms, b_ms = fold_bn(*bn_ms, eps=eps)
    a_ns, b_ns = fold_bn(*bn_ns, eps=eps)
    a_mc, b_mc = fold_bn(*bn_mc, eps=eps)

    w_eff = (ls * a_mc)[:, None] * w_conv                          # (C, K)
    alpha = 1.0 + ls * (a_ms - a_ns) + w_eff[:, pad]               # center tap folded in
    beta = ls * (b_ms - b_ns + b_mc)

    if scale_branch is not None:                                   # 1x1 dw-conv + BN is per-channel affine
        w_scale, bn_sc = scale_branch
        a_sc, b_sc = fold_bn(*bn_sc, eps=eps)
        alpha = alpha + ls * a_sc * jnp.reshape(w_scale, (-1,))
        beta = beta + ls * b_sc

    rows = [alpha, beta] + [w_eff[:, k] for k in range(K) if k != pad]
    return jnp.stack(rows, axis=0)[..., None].astype(jnp.float32)  # (K+1, C, 1)


def repmixer_forward(x_nchw, prm, *, block_rows=None,
                     vmem_limit_bytes=32 * 1024 * 1024):
    """x_nchw: (B, C, H, W). prm: (K+1, C, 1) from build_params. Returns (B, C, H, W)."""
    B, C, H, W = x_nchw.shape
    n_prm = prm.shape[0]
    K = n_prm - 1

    # Native NCHW layout: no pad / transpose round trips through HBM.
    if H == 1:
        x_rows = x_nchw.reshape(B, C, W)                       # free reshape (text case)
    else:
        # General H (not the text case): one transpose so the conv axis stays last.
        x_rows = jnp.transpose(x_nchw, (0, 2, 1, 3)).reshape(B * H, C, W)
    nrows = x_rows.shape[0]

    itemsize = jnp.dtype(x_nchw.dtype).itemsize
    c_pad = -(-C // 8) * 8
    w_pad = -(-W // 128) * 128
    slab_f32 = c_pad * w_pad * 4                               # one padded (C, W) slab, f32
    slab_io = c_pad * w_pad * itemsize                         # one padded (C, W) slab, io dtype

    if block_rows is None:
        # ~2 MiB of f32 compute copies per grid step amortizes the ~0.35 us/step overhead.
        target_tile_bytes = 2 * 1024 * 1024
        block_rows = max(1, target_tile_bytes // slab_f32)
        # VMEM cap: double-buffered in + out tiles (native dtype) + ~4 f32 temporaries,
        # against half of the scoped limit for headroom (safe on v7x's 64 MiB physical VMEM).
        per_row_vmem = 4 * slab_io + 4 * slab_f32
        vmem_cap = max(1, (vmem_limit_bytes // 2) // per_row_vmem)
        block_rows = min(block_rows, vmem_cap, nrows)
        if nrows >= 2:
            # keep >= 2 grid steps so both v7x TensorCores get work
            block_rows = min(block_rows, pl.cdiv(nrows, 2))
    block_rows = int(max(1, block_rows))
    grid = (pl.cdiv(nrows, block_rows),)

    cost = pl.CostEstimate(
        flops=2 * K * nrows * C * W,
        transcendentals=0,
        bytes_accessed=2 * nrows * C * W * itemsize + n_prm * C * 4,
    )

    out_rows = pl.pallas_call(
        _repmixer_kernel,
        out_shape=jax.ShapeDtypeStruct((nrows, C, W), x_nchw.dtype),
        grid_spec=pltpu.PrefetchScalarGridSpec(
            num_scalar_prefetch=0,
            grid=grid,
            in_specs=[
                pl.BlockSpec((block_rows, C, W), lambda r: (r, 0, 0)),
                pl.BlockSpec((n_prm, C, 1), lambda r: (0, 0, 0)),
            ],
            out_specs=pl.BlockSpec((block_rows, C, W), lambda r: (r, 0, 0)),
        ),
        compiler_params=pltpu.CompilerParams(
            dimension_semantics=("parallel",),
            vmem_limit_bytes=vmem_limit_bytes,
        ),
        cost_estimate=cost,
    )(x_rows, prm)

    if H == 1:
        return out_rows.reshape(B, C, H, W)
    return jnp.transpose(out_rows.reshape(B, H, C, W), (0, 2, 1, 3))


def reference_forward(x, w_conv, bn_ms, bn_ns, bn_mc, layer_scale, kernel_size,
                      scale_branch=None):
    """Pure-JAX reference mirroring the PyTorch module (NCHW, running-stat BN)."""
    B, C, H, W = x.shape
    pad = kernel_size // 2
    xp = jnp.pad(x, ((0, 0), (0, 0), (0, 0), (pad, pad)))
    conv = jnp.zeros_like(x)
    for k in range(kernel_size):
        conv = conv + xp[..., k:k + W] * w_conv[:, k][None, :, None, None]

    def bn(y, params):
        g, b, m, v = params
        return ((y - m[None, :, None, None]) / jnp.sqrt(v + 1e-5)[None, :, None, None]
                * g[None, :, None, None] + b[None, :, None, None])

    mixer = bn(x, bn_ms) + bn(conv, bn_mc)
    if scale_branch is not None:
        w_scale, bn_sc = scale_branch
        mixer = mixer + bn(x * w_scale[None, :, None, None], bn_sc)
    norm = bn(x, bn_ns)
    ls = jnp.reshape(layer_scale, (-1,))
    return x + ls[None, :, None, None] * (mixer - norm)


if __name__ == "__main__":
    key = jax.random.PRNGKey(0)
    run = jax.jit(repmixer_forward)

    def make_bn(k, C):
        k0, k1, k2, k3 = jax.random.split(k, 4)
        gamma = 1.0 + 0.1 * jax.random.normal(k0, (C,), dtype=jnp.float32)
        beta = 0.1 * jax.random.normal(k1, (C,), dtype=jnp.float32)
        mean = 0.1 * jax.random.normal(k2, (C,), dtype=jnp.float32)
        var = jax.random.uniform(k3, (C,), dtype=jnp.float32, minval=0.5, maxval=1.5)
        return gamma, beta, mean, var

    def check(k, *, B, C, W, K, dtype, with_scale_branch, rtol, atol):
        H = 1
        kx, kw, k1, k2, k3, k4, k5 = jax.random.split(k, 7)
        x = jax.random.normal(kx, (B, C, H, W), dtype=jnp.float32)
        # Depthwise conv weight: torch Conv2d(C, C, (1,K), groups=C, bias=False) -> (C,1,1,K) -> (C,K)
        w_conv = 0.1 * jax.random.normal(kw, (C, K), dtype=jnp.float32)
        bn_ms = make_bn(k1, C)       # mixer skip-BN
        bn_mc = make_bn(k2, C)       # mixer conv-branch BN
        bn_ns = make_bn(k3, C)       # norm skip-BN
        # layer_scale = 1e-5 * ones((dim, 1, 1)) per the module __init__
        layer_scale = jnp.full((C, 1, 1), 1e-5, dtype=jnp.float32)
        scale_branch = None
        if with_scale_branch:        # MobileOneBlock 1x1 depthwise scale branch (optional)
            w_scale = 0.1 * jax.random.normal(k4, (C,), dtype=jnp.float32)
            scale_branch = (w_scale, make_bn(k5, C))

        prm = build_params(w_conv, bn_ms, bn_ns, bn_mc, layer_scale,
                           scale_branch=scale_branch)
        x_in = x.astype(dtype)
        out = jax.block_until_ready(run(x_in, prm))
        ref = reference_forward(x_in.astype(jnp.float32), w_conv, bn_ms, bn_ns, bn_mc,
                                layer_scale, K, scale_branch=scale_branch)
        assert out.shape == (B, C, H, W) and out.dtype == dtype
        assert jnp.allclose(out.astype(jnp.float32), ref, rtol=rtol, atol=atol), \
            "mismatch vs reference"

    keys = jax.random.split(key, 3)
    # Text-style small case: batch=4, dim=32, H=1, seq=16, kernel_size=3, f32.
    check(keys[0], B=4, C=32, W=16, K=3, dtype=jnp.float32,
          with_scale_branch=False, rtol=1e-5, atol=1e-5)
    # Multi-step grid with a ragged last block, K=5, 1x1 scale branch folded in.
    check(keys[1], B=3, C=64, W=96, K=5, dtype=jnp.float32,
          with_scale_branch=True, rtol=1e-5, atol=1e-5)
    # bf16 activations (compute stays f32 in-kernel).
    check(keys[2], B=4, C=32, W=64, K=3, dtype=jnp.bfloat16,
          with_scale_branch=False, rtol=2e-2, atol=2e-2)

    print("KERNEL_OK")
</pallas_src>

<mosaic_0001>
module attributes {stable_mosaic.version = 11 : i64} {
  func.func @_repmixer_kernel(%arg0: i32, %arg1: memref<2x32x16xf32, #tpu.memory_space<vmem>>, %arg2: memref<4x32x1xf32, #tpu.memory_space<vmem>>, %arg3: memref<2x32x16xf32, #tpu.memory_space<vmem>>) attributes {dimension_semantics = [#tpu.dimension_semantics<parallel>], iteration_bounds = array<i64: 2>, scalar_prefetch = 0 : i64, scratch_operands = 0 : i64, tpu.core_type = #tpu.core_type<tc>, window_params = [{transform_indices = @transform_0, window_bounds = array<i64: 2, 32, 16>}, {pipeline_mode = #tpu.pipeline_mode<synchronous>, transform_indices = @transform_1, window_bounds = array<i64: 4, 32, 1>}, {transform_indices = @transform_2, window_bounds = array<i64: 2, 32, 16>}]} {
    %c0 = arith.constant 0 : index
    %c0_0 = arith.constant 0 : index
    %c0_1 = arith.constant 0 : index
    %0 = vector.load %arg1[%c0, %c0_0, %c0_1] : memref<2x32x16xf32, #tpu.memory_space<vmem>>, vector<2x32x16xf32>
    %c0_2 = arith.constant 0 : index
    %c0_3 = arith.constant 0 : index
    %c0_4 = arith.constant 0 : index
    %1 = vector.load %arg2[%c0_2, %c0_3, %c0_4] : memref<4x32x1xf32, #tpu.memory_space<vmem>>, vector<1x32x1xf32>
    %2 = vector.shape_cast %1 : vector<1x32x1xf32> to vector<32x1xf32>
    %c1 = arith.constant 1 : index
    %c0_5 = arith.constant 0 : index
    %c0_6 = arith.constant 0 : index
    %3 = vector.load %arg2[%c1, %c0_5, %c0_6] : memref<4x32x1xf32, #tpu.memory_space<vmem>>, vector<1x32x1xf32>
    %4 = vector.shape_cast %3 : vector<1x32x1xf32> to vector<32x1xf32>
    %5 = vector.shape_cast %2 : vector<32x1xf32> to vector<1x32x1xf32>
    %6 = vector.broadcast %5 : vector<1x32x1xf32> to vector<2x32x16xf32>
    %7 = arith.mulf %0, %6 : vector<2x32x16xf32>
    %8 = vector.shape_cast %4 : vector<32x1xf32> to vector<1x32x1xf32>
    %9 = vector.broadcast %8 : vector<1x32x1xf32> to vector<2x32x16xf32>
    %10 = arith.addf %7, %9 : vector<2x32x16xf32>
    %c2 = arith.constant 2 : index
    %c0_7 = arith.constant 0 : index
    %c0_8 = arith.constant 0 : index
    %11 = vector.load %arg2[%c2, %c0_7, %c0_8] : memref<4x32x1xf32, #tpu.memory_space<vmem>>, vector<1x32x1xf32>
    %12 = vector.shape_cast %11 : vector<1x32x1xf32> to vector<32x1xf32>
    %cst = arith.constant 0.000000e+00 : f32
    %13 = vector.broadcast %cst : f32 to vector<2x32x1xf32>
    %14 = vector.extract_strided_slice %0 {offsets = [0, 0, 0], sizes = [2, 32, 15], strides = [1, 1, 1]} : vector<2x32x16xf32> to vector<2x32x15xf32>
    %15 = tpu.concatenate %13, %14 in 2 : vector<2x32x1xf32>, vector<2x32x15xf32> -> vector<2x32x16xf32>
    %16 = vector.shape_cast %12 : vector<32x1xf32> to vector<1x32x1xf32>
    %17 = vector.broadcast %16 : vector<1x32x1xf32> to vector<2x32x16xf32>
    %18 = arith.mulf %15, %17 : vector<2x32x16xf32>
    %19 = arith.addf %10, %18 : vector<2x32x16xf32>
    %c3 = arith.constant 3 : index
    %c0_9 = arith.constant 0 : index
    %c0_10 = arith.constant 0 : index
    %20 = vector.load %arg2[%c3, %c0_9, %c0_10] : memref<4x32x1xf32, #tpu.memory_space<vmem>>, vector<1x32x1xf32>
    %21 = vector.shape_cast %20 : vector<1x32x1xf32> to vector<32x1xf32>
    %cst_11 = arith.constant 0.000000e+00 : f32
    %22 = vector.broadcast %cst_11 : f32 to vector<2x32x1xf32>
    %23 = vector.extract_strided_slice %0 {offsets = [0, 0, 1], sizes = [2, 32, 15], strides = [1, 1, 1]} : vector<2x32x16xf32> to vector<2x32x15xf32>
    %24 = tpu.concatenate %23, %22 in 2 : vector<2x32x15xf32>, vector<2x32x1xf32> -> vector<2x32x16xf32>
    %25 = vector.shape_cast %21 : vector<32x1xf32> to vector<1x32x1xf32>
    %26 = vector.broadcast %25 : vector<1x32x1xf32> to vector<2x32x16xf32>
    %27 = arith.mulf %24, %26 : vector<2x32x16xf32>
    %28 = arith.addf %19, %27 : vector<2x32x16xf32>
    %c0_12 = arith.constant 0 : index
    %c0_13 = arith.constant 0 : index
    %c0_14 = arith.constant 0 : index
    %29 = vector.load %arg3[%c0_12, %c0_13, %c0_14] : memref<2x32x16xf32, #tpu.memory_space<vmem>>, vector<2x32x16xf32>
    tpu.vector_store %arg3[%c0_12, %c0_13, %c0_14], %28 {strides = array<i32>} : memref<2x32x16xf32, #tpu.memory_space<vmem>>, vector<2x32x16xf32>,
    return
  }
  func.func @transform_0(%arg0: i32) -> (i32, i32, i32) {
    %c0_i32 = arith.constant 0 : i32
    %c0_i32_0 = arith.constant 0 : i32
    %c0_i32_1 = arith.constant 0 : i32
    return %arg0, %c0_i32, %c0_i32_0 : i32, i32, i32
  }
  func.func @transform_1(%arg0: i32) -> (i32, i32, i32) {
    %c0_i32 = arith.constant 0 : i32
    %c0_i32_0 = arith.constant 0 : i32
    %c0_i32_1 = arith.constant 0 : i32
    %c0_i32_2 = arith.constant 0 : i32
    return %c0_i32, %c0_i32_0, %c0_i32_1 : i32, i32, i32
  }
  func.func @transform_2(%arg0: i32) -> (i32, i32, i32) {
    %c0_i32 = arith.constant 0 : i32
    %c0_i32_0 = arith.constant 0 : i32
    %c0_i32_1 = arith.constant 0 : i32
    return %arg0, %c0_i32, %c0_i32_0 : i32, i32, i32
  }
}

</mosaic_0001>

<bundles_post_ra>
// kernel: repmixer_forward.1
= control target key start
LH: loop header
LB: loop body
LE: loop exit
PB: predicated region body
PF: predicated region fallthrough
CT: control target
= control target key end

     0   :  { %s514_s9 = smov 0   ;;  %s688_s0 = inlined_call_operand.vmem [shape: f32[4,32,16], index: 0, kind: input, shape index: {}]   ;;  %s689_s1 = inlined_call_operand.vmem [shape: f32[4,32,1], index: 1, kind: input, shape index: {}]   ;;  %s690_s2 = inlined_call_operand.vmem [shape: f32[4,32,16], index: 2, kind: output, shape index: {}]  }
   0x1 LB: > { %s448_s10 = sadd.s32 4294967295, %s494_s9   ;;  %p452_p0 = scmp.ge.s32.totalorder %s494_s9, 1  ;;  %s494_s9 = sphi %s514_s9, %s12_s9  }
   0x2   : > { %p114_p1 = scmp.lt.s32.totalorder %s494_s9, 3 }
   0x4   : > { %p115_p2 = pnand %p452_p0, %p114_p1 }
   0x5   : > { %v162_v0 = vld [vmem:[%s689_s1 + $0x10] sm:$0xff] (!%p115_p2)  ;;  %v160_v1 = vld [vmem:[%s689_s1] sm:$0xff] (!%p115_p2)  ;;  %v496_v2 = vmov (!%p115_p2), 0   ;;  %v163_v3 = vld [vmem:[%s689_s1 + $0x18] sm:$0xff] (!%p115_p2)  ;;  %s453_s27 = sshll.u32 (!%p115_p2), %s448_s10, 1  ;;  %s497_s21 = smov (!%p115_p2), 1  }
   0x6   : > { %118 = sbr.rel (%p115_p2) target bundleno = 201 (0xc9), region = 28  ;;  %487 = vset.pattern.permute.xlu1 (!%p115_p2), %v496_v2  ;;  %486 = vset.pattern.permute.xlu0 (!%p115_p2), %v496_v2  ;;  %v161_v4 = vld [vmem:[%s689_s1 + $0x8] sm:$0xff] (!%p115_p2)  ;;  %v459_v6 = vld [vmem:[%s689_s1 + $0x20] sm:$0xff] (!%p115_p2)  ;;  %v462_v7 = vld [vmem:[%s689_s1 + $0x38] sm:$0xff] (!%p115_p2)  ;;  %p139_p3 = scmp.lt.s32.totalorder (!%p115_p2), %s453_s27, 3  ;;  %vm262_vm0 = vcmask (!%p115_p2), 7168  }
   0x7   : > { %181 = vperm.xlu1 (!%p115_p2), %487, %v162_v0   ;;  %171 = vperm.xlu0 (!%p115_p2), %486, %v160_v1   ;;  %v460_v5 = vld [vmem:[%s689_s1 + $0x28] sm:$0xff] (!%p115_p2)  ;;  %v461_v8 = vld [vmem:[%s689_s1 + $0x30] sm:$0xff] (!%p115_p2)  ;;  %v463_v10 = vld [vmem:[%s689_s1 + $0x40] sm:$0xff] (!%p115_p2)  ;;  %s498_s22 = smov (!%p115_p2), 127   ;;  %vm336_vm1 = vcmask (!%p115_p2), 121856   ;;  %vm381_vm2 = vcmask (!%p115_p2), 130048  }
   0x8   : > { %v464_v9 = vld [vmem:[%s689_s1 + $0x48] sm:$0xff] (!%p115_p2)  ;;  %v466_v11 = vld [vmem:[%s689_s1 + $0x58] sm:$0xff] (!%p115_p2)  ;;  %v465_v12 = vld [vmem:[%s689_s1 + $0x50] sm:$0xff] (!%p115_p2) }
   0x9   : > { %v468_v13 = vld [vmem:[%s689_s1 + $0x68] sm:$0xff] (!%p115_p2)  ;;  %v467_v14 = vld [vmem:[%s689_s1 + $0x60] sm:$0xff] (!%p115_p2)  ;;  %v470_v15 = vld [vmem:[%s689_s1 + $0x78] sm:$0xff] (!%p115_p2) }
   0xa   : > { %v469_v16 = vld [vmem:[%s689_s1 + $0x70] sm:$0xff] (!%p115_p2) }
   0xb   : > { %186 = vperm.xlu1 (!%p115_p2), %487, %v163_v3   ;;  %176 = vperm.xlu0 (!%p115_p2), %486, %v161_v4  }
   0xd   : > { %s692_s27 = smov (!%p139_p3, %s453_s27), 3 }
   0xe   : > { %s473_s13 = sshll.u32 %s692_s27, 5 }
   0xf   : > { %204 = vperm.xlu1 %487, %v460_v5   ;;  %199 = vperm.xlu0 %486, %v459_v6   ;;  %s143_s20 = scalar_lea.vmem %s688_s0, %s473_s13  ;;  %s639_s25 = scalar_lea.vmem %s690_s2, %s473_s13 }
  0x10   : > { %v153_v17 = vld [vmem:[%s143_s20 + $0x8] sm:$0xff]  ;;  %v152_v18 = vld [vmem:[%s143_s20] sm:$0xff]  ;;  %v155_v19 = vld [vmem:[%s143_s20 + $0x18] sm:$0xff] }
  0x11   : > { %v154_v20 = vld [vmem:[%s143_s20 + $0x10] sm:$0xff]  ;;  %v578_v21 = vld [vmem:[%s143_s20 + $0x28] sm:$0xff]  ;;  %v580_v22 = vld [vmem:[%s143_s20 + $0x20] sm:$0xff] }
  0x12   : > { %v584_v23 = vld [vmem:[%s143_s20 + $0x38] sm:$0xff]  ;;  %v586_v24 = vld [vmem:[%s143_s20 + $0x30] sm:$0xff] }
  0x13   : > { %214 = vperm.xlu1 %487, %v462_v7   ;;  %209 = vperm.xlu0 %486, %v461_v8  }
  0x17   : > { %278 = vperm.xlu1 %487, %v464_v9   ;;  %273 = vperm.xlu0 %486, %v463_v10  }
  0x1b   : > { %288 = vperm.xlu1 %487, %v466_v11   ;;  %283 = vperm.xlu0 %486, %v465_v12  }
  0x1f   : > { %352 = vperm.xlu1 %487, %v468_v13   ;;  %347 = vperm.xlu0 %486, %v467_v14  }
  0x23   : > { %362 = vperm.xlu1 %487, %v470_v15   ;;  %357 = vperm.xlu0 %486, %v469_v16  }
  0x27   : > { %240 = vrot.lane.b32.xlu1 %v153_v17, %s497_s21  ;;  %238 = vrot.lane.b32.xlu0 %v152_v18, %s497_s21 }
  0x2b   : > { %244 = vrot.lane.b32.xlu1 %v155_v19, %s497_s21  ;;  %242 = vrot.lane.b32.xlu0 %v154_v20, %s497_s21 }
  0x2f   : > { %248 = vrot.lane.b32.xlu1 %v578_v21, %s497_s21  ;;  %246 = vrot.lane.b32.xlu0 %v580_v22, %s497_s21 }
  0x33   : > { %252 = vrot.lane.b32.xlu1 %v584_v23, %s497_s21  ;;  %250 = vrot.lane.b32.xlu0 %v586_v24, %s497_s21 }
  0x37   : > { %314 = vrot.lane.b32.xlu1 %v153_v17, %s498_s22  ;;  %312 = vrot.lane.b32.xlu0 %v152_v18, %s498_s22 }
  0x3b   : > { %318 = vrot.lane.b32.xlu1 %v155_v19, %s498_s22  ;;  %316 = vrot.lane.b32.xlu0 %v154_v20, %s498_s22 }
  0x3f   : > { %322 = vrot.lane.b32.xlu1 %v578_v21, %s498_s22  ;;  %320 = vrot.lane.b32.xlu0 %v580_v22, %s498_s22 }
  0x43   : > { %326 = vrot.lane.b32.xlu1 %v584_v23, %s498_s22  ;;  %324 = vrot.lane.b32.xlu0 %v586_v24, %s498_s22 }
  0x86   : > { %v594_v25 = vpop.permute.xlu1 %181  ;;  %v172_v26 = vpop.permute.xlu0 %171 }
  0x87   : > { %v189_v49 = vmul.f32 %v172_v26, %v152_v18  ;;  %v191_v59 = vmul.f32 %v594_v25, %v154_v20  ;;  %v193_v9 = vmul.f32 %v172_v26, %v580_v22 }
  0x8a   : > { %v596_v27 = vpop.permute.xlu1 %186  ;;  %v177_v28 = vpop.permute.xlu0 %176 }
  0x8b   : > { %v190_v50 = vmul.f32 %v177_v28, %v153_v17  ;;  %v192_v60 = vmul.f32 %v596_v27, %v155_v19  ;;  %v194_v10 = vmul.f32 %v177_v28, %v578_v21 }
  0x8e   : > { %v598_v29 = vpop.permute.xlu1 %204  ;;  %v600_v30 = vpop.permute.xlu0 %199 }
  0x8f   : > { %v218_v55 = vadd.f32 %v598_v29, %v190_v50  ;;  %v217_v56 = vadd.f32 %v600_v30, %v189_v49  ;;  %v222_v28 = vadd.f32 %v598_v29, %v194_v10 }
  0x92   : > { %v602_v31 = vpop.permute.xlu1 %214  ;;  %v604_v32 = vpop.permute.xlu0 %209 }
  0x93   : > { %v220_v11 = vadd.f32 %v602_v31, %v192_v60  ;;  %v219_v12 = vadd.f32 %v604_v32, %v191_v59 }
  0x96   : > { %v279_v33 = vpop.permute.xlu1 %278  ;;  %v274_v34 = vpop.permute.xlu0 %273 }
  0x9a   : > { %v606_v35 = vpop.permute.xlu1 %288  ;;  %v608_v36 = vpop.permute.xlu0 %283 }
  0x9e   : > { %v610_v37 = vpop.permute.xlu1 %352  ;;  %v612_v38 = vpop.permute.xlu0 %347 }
  0xa2   : > { %v614_v39 = vpop.permute.xlu1 %362  ;;  %v616_v40 = vpop.permute.xlu0 %357 }
  0xa6   : > { %v241_v41 = vpop.permute.xlu1 %240  ;;  %v239_v42 = vpop.permute.xlu0 %238 }
  0xa7   : > { %v264_v47 = vsel %vm262_vm0, 0.0, %v241_v41  ;;  %v263_v48 = vsel %vm262_vm0, 0.0, %v239_v42 }
  0xa8   : > { %v292_v51 = vmul.f32 %v279_v33, %v264_v47  ;;  %v291_v52 = vmul.f32 %v274_v34, %v263_v48 }
  0xaa   : > { %v245_v43 = vpop.permute.xlu1 %244  ;;  %v243_v44 = vpop.permute.xlu0 %242  ;;  %v300_v61 = vadd.f32 %v292_v51, %v218_v55  ;;  %v299_v62 = vadd.f32 %v291_v52, %v217_v56 }
  0xab   : > { %v266_v57 = vsel %vm262_vm0, 0.0, %v245_v43  ;;  %v265_v58 = vsel %vm262_vm0, 0.0, %v243_v44  ;;  %v195_v43 = vmul.f32 %v594_v25, %v586_v24  ;;  %v196_v44 = vmul.f32 %v596_v27, %v584_v23 }
  0xac   : > { %v294_v1 = vmul.f32 %v606_v35, %v266_v57  ;;  %v293_v2 = vmul.f32 %v608_v36, %v265_v58 }
  0xad   : > { %v224_v25 = vadd.f32 %v602_v31, %v196_v44  ;;  %v223_v27 = vadd.f32 %v604_v32, %v195_v43 }
  0xae   : > { %v249_v45 = vpop.permute.xlu1 %248  ;;  %v247_v46 = vpop.permute.xlu0 %246  ;;  %v302_v41 = vadd.f32 %v294_v1, %v220_v11  ;;  %v301_v22 = vadd.f32 %v293_v2, %v219_v12 }
  0xaf   : > { %v268_v5 = vsel %vm262_vm0, 0.0, %v249_v45  ;;  %v267_v6 = vsel %vm262_vm0, 0.0, %v247_v46 }
  0xb0   : > { %v296_v17 = vmul.f32 %v279_v33, %v268_v5  ;;  %v295_v18 = vmul.f32 %v274_v34, %v267_v6  ;;  %v221_v33 = vadd.f32 %v600_v30, %v193_v9 }
  0xb2   : > { %v253_v53 = vpop.permute.xlu1 %252  ;;  %v251_v54 = vpop.permute.xlu0 %250  ;;  %v304_v49 = vadd.f32 %v296_v17, %v222_v28  ;;  %v303_v29 = vadd.f32 %v295_v18, %v221_v33 }
  0xb3   : > { %v270_v34 = vsel %vm262_vm0, 0.0, %v253_v53  ;;  %v269_v42 = vsel %vm262_vm0, 0.0, %v251_v54 }
  0xb4   : > { %v298_v51 = vmul.f32 %v606_v35, %v270_v34  ;;  %v297_v52 = vmul.f32 %v608_v36, %v269_v42 }
  0xb6   : > { %v315_v63 = vpop.permute.xlu1 %314  ;;  %v313_v0 = vpop.permute.xlu0 %312  ;;  %v306_v57 = vadd.f32 %v298_v51, %v224_v25  ;;  %v305_v58 = vadd.f32 %v297_v52, %v223_v27 }
  0xb7   : > { %v338_v3 = vsel %vm336_vm1, %v315_v63, 0.0  ;;  %v337_v4 = vsel %vm336_vm1, %v313_v0, 0.0 }
  0xb8   : > { %v366_v7 = vmul.f32 %v610_v37, %v338_v3  ;;  %v365_v8 = vmul.f32 %v612_v38, %v337_v4 }
  0xba   : > { %v374_v13 = vadd.f32 %v366_v7, %v300_v61  ;;  %v373_v14 = vadd.f32 %v365_v8, %v299_v62  ;;  %v319_v15 = vpop.permute.xlu1 %318  ;;  %v317_v16 = vpop.permute.xlu0 %316 }
  0xbb   : > { %v340_v19 = vsel %vm336_vm1, %v319_v15, 0.0  ;;  %v339_v20 = vsel %vm336_vm1, %v317_v16, 0.0 }
  0xbc   : > { %383 = vst.msk [vmem:[%s639_s25 + $0x8] sm:$0xff] %vm381_vm2, %v374_v13  ;;  %382 = vst.msk [vmem:[%s639_s25] sm:$0xff] %vm381_vm2, %v373_v14  ;;  %v368_v21 = vmul.f32 %v614_v39, %v340_v19  ;;  %v367_v26 = vmul.f32 %v616_v40, %v339_v20 }
  0xbe   : > { %v376_v45 = vadd.f32 %v368_v21, %v302_v41  ;;  %v375_v46 = vadd.f32 %v367_v26, %v301_v22  ;;  %v323_v47 = vpop.permute.xlu1 %322  ;;  %v321_v48 = vpop.permute.xlu0 %320 }
  0xbf   : > { %v342_v50 = vsel %vm336_vm1, %v323_v47, 0.0  ;;  %v341_v30 = vsel %vm336_vm1, %v321_v48, 0.0 }
  0xc0   : > { %385 = vst.msk [vmem:[%s639_s25 + $0x18] sm:$0xff] %vm381_vm2, %v376_v45  ;;  %384 = vst.msk [vmem:[%s639_s25 + $0x10] sm:$0xff] %vm381_vm2, %v375_v46  ;;  %v370_v23 = vmul.f32 %v610_v37, %v342_v50  ;;  %v369_v24 = vmul.f32 %v612_v38, %v341_v30 }
  0xc2   : > { %v378_v53 = vadd.f32 %v370_v23, %v304_v49  ;;  %v377_v35 = vadd.f32 %v369_v24, %v303_v29  ;;  %v327_v54 = vpop.permute.xlu1 %326  ;;  %v325_v55 = vpop.permute.xlu0 %324 }
  0xc3   : > { %v344_v36 = vsel %vm336_vm1, %v327_v54, 0.0  ;;  %v343_v56 = vsel %vm336_vm1, %v325_v55, 0.0 }
  0xc4   : > { %387 = vst.msk [vmem:[%s639_s25 + $0x28] sm:$0xff] %vm381_vm2, %v378_v53  ;;  %386 = vst.msk [vmem:[%s639_s25 + $0x20] sm:$0xff] %vm381_vm2, %v377_v35  ;;  %v372_v31 = vmul.f32 %v614_v39, %v344_v36  ;;  %v371_v37 = vmul.f32 %v616_v40, %v343_v56 }
  0xc6   : > { %v380_v32 = vadd.f32 %v372_v31, %v306_v57  ;;  %v379_v38 = vadd.f32 %v371_v37, %v305_v58 }
  0xc8   : > { %389 = vst.msk [vmem:[%s639_s25 + $0x38] sm:$0xff] %vm381_vm2, %v380_v32  ;;  %388 = vst.msk [vmem:[%s639_s25 + $0x30] sm:$0xff] %vm381_vm2, %v379_v38 }
  0xc9 PF: > { %s12_s9 = sadd.s32 1, %s494_s9  }
  0xca   : > { %p9_p4 = scmp.ge.s32.totalorder %s12_s9, 4  }
  0xcc   :  { %11 = sbr.rel (!%p9_p4) target bundleno = 1 (0x1), region = 61 }

</bundles_post_ra>
